<compile_context>
chip_gen: v7x
topology: tpu7x:2x2x1
jax: 0.10.0
libtpu: 0.0.40
codegen_flags: <defaults>
</compile_context>

<pallas_src>
import functools

import jax
import jax.numpy as jnp
from jax.experimental import pallas as pl
from jax.experimental.pallas import tpu as pltpu


_LANE = 128
# Conservative: leaves headroom inside v5e's 16 MiB default scoped VMEM and is
# far below the v6e (32 MiB scoped / 128 MiB phys) and v7x (32/64 MiB) limits.
_VMEM_BUDGET_BYTES = 14 * 1024 * 1024


def _round_up(x, m):
    return (x + m - 1) // m * m


def _logreg_kernel(x_ref, w_ref, b_ref, o_ref):
    # x_ref: (TB, F) native dtype; w_ref: (F, Lp) f32; b_ref: (1, Lp) f32;
    # o_ref: (TB, Lp) f32.  Cast AFTER the DMA so HBM traffic stays narrow.
    x = x_ref[...].astype(jnp.float32)
    logits = jnp.dot(x, w_ref[...], preferred_element_type=jnp.float32)
    # sigmoid = exp + recip -> EUP slot, free while the kernel is DMA-bound.
    o_ref[...] = jax.nn.sigmoid(logits + b_ref[...])


def _choose_block_b(batch, num_features, l_pad, x_bytes, sub):
    """Largest batch tile (multiple of `sub`) that fits the VMEM budget."""
    # Double-buffered weight + bias (grid-invariant, still 2 buffers) ...
    fixed = 2 * num_features * l_pad * 4 + 2 * l_pad * 4
    # ... plus per-row cost of double-buffered x tile and output tile.
    per_row = 2 * num_features * x_bytes + 2 * l_pad * 4
    avail = max(_VMEM_BUDGET_BYTES - fixed, per_row * sub)
    bb = max((avail // per_row) // sub * sub, sub)
    bb = min(bb, 1024, _round_up(batch, sub))
    if batch > sub:
        # Keep >= 2 grid steps so the "parallel" batch axis can shard across
        # v7x's 2 TensorCores (and amortization still holds on v5e/v6e).
        bb = min(bb, _round_up(pl.cdiv(batch, 2), sub))
    return int(max(bb, sub))


@functools.partial(jax.jit, static_argnames=("block_b",))
def baseline_logistic_regression(x, weight, bias, *, block_b=None):
    """x: [batch, F] (any float dtype), weight: [L, F], bias: [L] -> [batch, L] f32."""
    batch, num_features = x.shape
    num_labels = weight.shape[0]
    l_pad = _round_up(max(num_labels, 1), _LANE)

    # Small parameter tensors: pad the label axis to a lane-dense 128 multiple.
    w_t = weight.astype(jnp.float32).T                                   # (F, L)
    w_pad = jnp.zeros((num_features, l_pad), jnp.float32).at[:, :num_labels].set(w_t)
    b_pad = jnp.zeros((1, l_pad), jnp.float32).at[0, :num_labels].set(
        bias.astype(jnp.float32))

    x_bytes = jnp.dtype(x.dtype).itemsize
    sub = max(8, 32 // x_bytes)  # sublane granularity: 8 f32, 16 bf16, 32 int8
    if block_b is None:
        block_b = _choose_block_b(batch, num_features, l_pad, x_bytes, sub)

    grid = (pl.cdiv(batch, block_b),)

    # TODO(synk): for very large num_features (block_b*F*x_bytes*2 >> VMEM) add a
    # K grid axis with an f32 accumulator scratch + pl.when init/finalize.
    out_padded = pl.pallas_call(
        _logreg_kernel,
        out_shape=jax.ShapeDtypeStruct((batch, l_pad), jnp.float32),
        grid_spec=pltpu.PrefetchScalarGridSpec(
            num_scalar_prefetch=0,
            grid=grid,
            in_specs=[
                pl.BlockSpec((block_b, num_features), lambda i: (i, 0)),
                pl.BlockSpec((num_features, l_pad), lambda i: (0, 0)),
                pl.BlockSpec((1, l_pad), lambda i: (0, 0)),
            ],
            out_specs=pl.BlockSpec((block_b, l_pad), lambda i: (i, 0)),
        ),
        compiler_params=pltpu.CompilerParams(
            dimension_semantics=("parallel",),
        ),
        cost_estimate=pl.CostEstimate(
            flops=2 * batch * num_features * l_pad,
            transcendentals=batch * l_pad,
            bytes_accessed=batch * num_features * x_bytes
            + num_features * l_pad * 4
            + batch * l_pad * 4,
        ),
    )(x, w_pad, b_pad)

    return out_padded[:, :num_labels]


if __name__ == "__main__":
    key = jax.random.PRNGKey(0)
    batch = 50            # ragged last tile + 2 grid steps
    num_features = 256
    num_labels = 4

    kx, kw, kb = jax.random.split(key, 3)
    x = jax.random.normal(kx, (batch, num_features), dtype=jnp.float32)
    # Deterministic init mimicking nn.Linear's uniform(-1/sqrt(F), 1/sqrt(F))
    bound = 1.0 / jnp.sqrt(jnp.float32(num_features))
    weight = jax.random.uniform(kw, (num_labels, num_features),
                                minval=-bound, maxval=bound, dtype=jnp.float32)
    bias = jax.random.uniform(kb, (num_labels,),
                              minval=-bound, maxval=bound, dtype=jnp.float32)

    out = baseline_logistic_regression(x, weight, bias)
    out = jax.block_until_ready(out)

    ref = jax.nn.sigmoid(x @ weight.T + bias)
    assert out.shape == (batch, num_labels)
    assert jnp.allclose(out, ref, atol=1e-5, rtol=1e-5)

    # bf16 activations: the f32 cast happens inside the kernel (post-DMA),
    # matching torch's x.float() semantics.
    x_bf16 = x.astype(jnp.bfloat16)
    out_bf16 = jax.block_until_ready(
        baseline_logistic_regression(x_bf16, weight, bias))
    ref_bf16 = jax.nn.sigmoid(x_bf16.astype(jnp.float32) @ weight.T + bias)
    assert out_bf16.shape == (batch, num_labels)
    assert jnp.allclose(out_bf16, ref_bf16, atol=2e-3, rtol=2e-3)

    print("KERNEL_OK")
</pallas_src>

<mosaic_0001>
module attributes {stable_mosaic.version = 11 : i64} {
  func.func @_logreg_kernel(%arg0: i32, %arg1: memref<32x256xf32, #tpu.memory_space<vmem>>, %arg2: memref<256x128xf32, #tpu.memory_space<vmem>>, %arg3: memref<1x128xf32, #tpu.memory_space<vmem>>, %arg4: memref<32x128xf32, #tpu.memory_space<vmem>>) attributes {dimension_semantics = [#tpu.dimension_semantics<parallel>], iteration_bounds = array<i64: 2>, scalar_prefetch = 0 : i64, scratch_operands = 0 : i64, tpu.core_type = #tpu.core_type<tc>, window_params = [{transform_indices = @transform_0, window_bounds = array<i64: 32, 256>}, {pipeline_mode = #tpu.pipeline_mode<synchronous>, transform_indices = @transform_1, window_bounds = array<i64: 256, 128>}, {pipeline_mode = #tpu.pipeline_mode<synchronous>, transform_indices = @transform_2, window_bounds = array<i64: 1, 128>}, {transform_indices = @transform_3, window_bounds = array<i64: 32, 128>}]} {
    %c0 = arith.constant 0 : index
    %c0_0 = arith.constant 0 : index
    %0 = vector.load %arg1[%c0, %c0_0] : memref<32x256xf32, #tpu.memory_space<vmem>>, vector<32x256xf32>
    %c0_1 = arith.constant 0 : index
    %c0_2 = arith.constant 0 : index
    %1 = vector.load %arg2[%c0_1, %c0_2] : memref<256x128xf32, #tpu.memory_space<vmem>>, vector<256x128xf32>
    %cst = arith.constant dense<0.000000e+00> : vector<32x128xf32>
    %2 = tpu.matmul %0, %1, %cst {dimension_numbers = #tpu.dot_dimension_numbers<[1], [0], [0], [1], [0, 0, 1, 1], [], []>} : vector<32x256xf32>, vector<256x128xf32>, vector<32x128xf32> -> vector<32x128xf32>
    %c0_3 = arith.constant 0 : index
    %c0_4 = arith.constant 0 : index
    %3 = vector.load %arg3[%c0_3, %c0_4] : memref<1x128xf32, #tpu.memory_space<vmem>>, vector<1x128xf32>
    %4 = vector.broadcast %3 : vector<1x128xf32> to vector<32x128xf32>
    %5 = arith.addf %2, %4 : vector<32x128xf32>
    %6 = arith.negf %5 : vector<32x128xf32>
    %7 = math.exp %6 : vector<32x128xf32>
    %cst_5 = arith.constant 1.000000e+00 : f32
    %8 = vector.broadcast %cst_5 : f32 to vector<32x128xf32>
    %9 = arith.addf %8, %7 : vector<32x128xf32>
    %10 = arith.divf %8, %9 : vector<32x128xf32>
    %c0_6 = arith.constant 0 : index
    %c0_7 = arith.constant 0 : index
    %11 = vector.load %arg4[%c0_6, %c0_7] : memref<32x128xf32, #tpu.memory_space<vmem>>, vector<32x128xf32>
    tpu.vector_store %arg4[%c0_6, %c0_7], %10 {strides = array<i32>} : memref<32x128xf32, #tpu.memory_space<vmem>>, vector<32x128xf32>,
    return
  }
  func.func @transform_0(%arg0: i32) -> (i32, i32) {
    %c0_i32 = arith.constant 0 : i32
    %c0_i32_0 = arith.constant 0 : i32
    return %arg0, %c0_i32 : i32, i32
  }
  func.func @transform_1(%arg0: i32) -> (i32, i32) {
    %c0_i32 = arith.constant 0 : i32
    %c0_i32_0 = arith.constant 0 : i32
    %c0_i32_1 = arith.constant 0 : i32
    return %c0_i32, %c0_i32_0 : i32, i32
  }
  func.func @transform_2(%arg0: i32) -> (i32, i32) {
    %c0_i32 = arith.constant 0 : i32
    %c0_i32_0 = arith.constant 0 : i32
    %c0_i32_1 = arith.constant 0 : i32
    return %c0_i32, %c0_i32_0 : i32, i32
  }
  func.func @transform_3(%arg0: i32) -> (i32, i32) {
    %c0_i32 = arith.constant 0 : i32
    %c0_i32_0 = arith.constant 0 : i32
    return %arg0, %c0_i32 : i32, i32
  }
}

</mosaic_0001>

<bundles_post_ra>
// kernel: baseline_logistic_regression.1
= control target key start
LH: loop header
LB: loop body
LE: loop exit
PB: predicated region body
PF: predicated region fallthrough
CT: control target
= control target key end

     0   :  { %s925_s12 = smov 0   ;;  %s927_s13 = smov 0   ;;  %s1134_s0 = inlined_call_operand.vmem [shape: f32[50,256], index: 0, kind: input, shape index: {}]   ;;  %s1135_s1 = inlined_call_operand.vmem [shape: f32[256,128], index: 1, kind: input, shape index: {}]   ;;  %s1136_s2 = inlined_call_operand.vmem [shape: f32[1,128], index: 2, kind: input, shape index: {}]   ;;  %s1137_s3 = inlined_call_operand.vmem [shape: f32[50,128], index: 3, kind: output, shape index: {}]  }
   0x1   :  { %s929_s14 = smov 0  }
   0x2 LB: > { %s938_s15 = sadd.s32 4294967295, %s871_s14   ;;  %s940_s16 = sadd.s32 1, %s871_s14   ;;  %s871_s14 = sphi %s929_s14, %s1144_s14   ;;  %s867_s13 = sphi %s927_s13, %s1143_s13   ;;  %s863_s12 = sphi %s925_s12, %s1142_s12  }
   0x3   : > { %s85_s17 = ssub.s32 %s871_s14, %s940_s16  ;;  %s88_s18 = sadd.s32 1, %s867_s13 }
   0x4   : > { %p86_p0 = scmp.eq.s32.totalorder %s85_s17, 0  ;;  %p98_p1 = scmp.ne.s32.totalorder %s867_s13, %s863_s12 }
   0x5   : > { %p99_p2 = scmp.eq.s32.totalorder %s938_s15, 1  ;;  %p590_p3 = scmp.ge.s32.totalorder %s871_s14, 1 }
   0x6   : > { %s948_s19 = scalar_select %p86_p0, %s867_s13, %s88_s18  }
   0x7   : > { %p950_p4 = por %p99_p2, %p98_p1  ;;  %p149_p5 = scmp.lt.s32.totalorder %s871_s14, 3 }
   0x9   : > { %p150_p6 = pnand %p590_p3, %p149_p5 }
   0xa   : > { %v224_v0 = vld [vmem:[%s1135_s1 + $0x80] sm:$0xff] (!%p150_p6)  ;;  %v225_v1 = vld [vmem:[%s1135_s1 + $0x88] sm:$0xff] (!%p150_p6)  ;;  %s964_s27 = sshll.u32 (!%p150_p6), %s938_s15, 2  ;;  %v226_v5 = vld [vmem:[%s1135_s1 + $0x90] sm:$0xff] (!%p150_p6) }
   0xb   : > { %153 = sbr.rel (%p150_p6) target bundleno = 343 (0x157), region = 32  ;;  %v208_v2 = vld [vmem:[%s1135_s1] sm:$0xff] (!%p150_p6)  ;;  %v665_v3 = vpack.c.bf16 (!%p150_p6), %v225_v1, %v224_v0  ;;  %v209_v4 = vld [vmem:[%s1135_s1 + $0x8] sm:$0xff] (!%p150_p6)  ;;  %v227_v6 = vld [vmem:[%s1135_s1 + $0x98] sm:$0xff] (!%p150_p6)  ;;  %p184_p7 = scmp.lt.s32.totalorder (!%p150_p6), %s964_s27, 6 }
   0xc   : > { %v667_v7 = vpack.c.bf16 (!%p150_p6), %v209_v4, %v208_v2  ;;  %v669_v8 = vpack.c.bf16 (!%p150_p6), %v227_v6, %v226_v5  ;;  %v210_v9 = vld [vmem:[%s1135_s1 + $0x10] sm:$0xff] (!%p150_p6)  ;;  %v211_v10 = vld [vmem:[%s1135_s1 + $0x18] sm:$0xff] (!%p150_p6)  ;;  %v228_v11 = vld [vmem:[%s1135_s1 + $0xa0] sm:$0xff] (!%p150_p6) }
   0xd   : > { %666 = vmatprep.subr.bf16.mxu0 (!%p150_p6), %v665_v3  ;;  %697 = vmatprep.subr.bf16.mxu1 (!%p150_p6), %v665_v3  ;;  %v229_v12 = vld [vmem:[%s1135_s1 + $0xa8] sm:$0xff] (!%p150_p6)  ;;  %v671_v13 = vpack.c.bf16 (!%p150_p6), %v211_v10, %v210_v9  ;;  %v212_v15 = vld [vmem:[%s1135_s1 + $0x20] sm:$0xff] (!%p150_p6)  ;;  %v230_v17 = vld [vmem:[%s1135_s1 + $0xb0] sm:$0xff] (!%p150_p6) }
   0xe   : > { %668 = vmatpush3.bf16.msra.mxu0 (!%p150_p6), %v667_v7  ;;  %705 = vmatpush3.bf16.msra.mxu1 (!%p150_p6), %v667_v7  ;;  %v673_v14 = vpack.c.bf16 (!%p150_p6), %v229_v12, %v228_v11  ;;  %v213_v16 = vld [vmem:[%s1135_s1 + $0x28] sm:$0xff] (!%p150_p6)  ;;  %v231_v18 = vld [vmem:[%s1135_s1 + $0xb8] sm:$0xff] (!%p150_p6)  ;;  %v214_v21 = vld [vmem:[%s1135_s1 + $0x30] sm:$0xff] (!%p150_p6) }
   0xf   : > { %670 = vmatprep.subr.bf16.mxu0 (!%p150_p6), %v669_v8  ;;  %698 = vmatprep.subr.bf16.mxu1 (!%p150_p6), %v669_v8  ;;  %v675_v19 = vpack.c.bf16 (!%p150_p6), %v213_v16, %v212_v15  ;;  %v677_v20 = vpack.c.bf16 (!%p150_p6), %v231_v18, %v230_v17  ;;  %v215_v22 = vld [vmem:[%s1135_s1 + $0x38] sm:$0xff] (!%p150_p6)  ;;  %v232_v23 = vld [vmem:[%s1135_s1 + $0xc0] sm:$0xff] (!%p150_p6)  ;;  %v233_v24 = vld [vmem:[%s1135_s1 + $0xc8] sm:$0xff] (!%p150_p6) }
  0x10   : > { %v679_v27 = vpack.c.bf16 (!%p150_p6), %v215_v22, %v214_v21  ;;  %v681_v28 = vpack.c.bf16 (!%p150_p6), %v233_v24, %v232_v23  ;;  %v216_v29 = vld [vmem:[%s1135_s1 + $0x40] sm:$0xff] (!%p150_p6)  ;;  %v217_v30 = vld [vmem:[%s1135_s1 + $0x48] sm:$0xff] (!%p150_p6)  ;;  %v234_v31 = vld [vmem:[%s1135_s1 + $0xd0] sm:$0xff] (!%p150_p6) }
  0x11   : > { %v235_v32 = vld [vmem:[%s1135_s1 + $0xd8] sm:$0xff] (!%p150_p6)  ;;  %v683_v33 = vpack.c.bf16 (!%p150_p6), %v217_v30, %v216_v29  ;;  %v218_v35 = vld [vmem:[%s1135_s1 + $0x50] sm:$0xff] (!%p150_p6)  ;;  %v236_v37 = vld [vmem:[%s1135_s1 + $0xe0] sm:$0xff] (!%p150_p6) }
  0x12   : > { %s185_s21 = scalar_select %p184_p7, %s964_s27, 6  ;;  %672 = vmatpush3.bf16.msra.mxu0 %v671_v13  ;;  %706 = vmatpush3.bf16.msra.mxu1 %v671_v13  ;;  %v685_v34 = vpack.c.bf16 %v235_v32, %v234_v31  ;;  %v219_v36 = vld [vmem:[%s1135_s1 + $0x58] sm:$0xff]  ;;  %v237_v38 = vld [vmem:[%s1135_s1 + $0xe8] sm:$0xff]  ;;  %v220_v41 = vld [vmem:[%s1135_s1 + $0x60] sm:$0xff] }
  0x13   : > { %674 = vmatprep.subr.bf16.mxu0 %v673_v14  ;;  %699 = vmatprep.subr.bf16.mxu1 %v673_v14  ;;  %v687_v39 = vpack.c.bf16 %v219_v36, %v218_v35  ;;  %v689_v40 = vpack.c.bf16 %v237_v38, %v236_v37  ;;  %v221_v42 = vld [vmem:[%s1135_s1 + $0x68] sm:$0xff]  ;;  %v238_v43 = vld [vmem:[%s1135_s1 + $0xf0] sm:$0xff]  ;;  %v239_v44 = vld [vmem:[%s1135_s1 + $0xf8] sm:$0xff]  ;;  %s618_s10 = sshll.u32 (%p950_p4), %s938_s15, 5 }
  0x14   : > { %s617_s26 = sshll.u32 %s185_s21, 4  ;;  %v691_v45 = vpack.c.bf16 %v221_v42, %v220_v41  ;;  %v693_v46 = vpack.c.bf16 %v239_v44, %v238_v43  ;;  %v222_v47 = vld [vmem:[%s1135_s1 + $0x70] sm:$0xff]  ;;  %v223_v48 = vld [vmem:[%s1135_s1 + $0x78] sm:$0xff]  ;;  %v595_v58 = vld [vmem:[%s1136_s2] ss:$0 sm:$0xff]  ;;  %s1085_s17 = scalar_lea.vmem (%p950_p4), %s1137_s3, %s618_s10  }
  0x15   : > { %s1004_s7 = scalar_lea.vmem %s1134_s0, %s617_s26  ;;  %v695_v49 = vpack.c.bf16 %v223_v48, %v222_v47 }
  0x16   : > { %v201_v25 = vld [vmem:[%s1004_s7 + $0x8] sm:$0xff]  ;;  %676 = vmatpush3.bf16.msra.mxu0 %v675_v19  ;;  %707 = vmatpush3.bf16.msra.mxu1 %v675_v19  ;;  %v200_v50 = vld [vmem:[%s1004_s7] sm:$0xff]  ;;  %v203_v52 = vld [vmem:[%s1004_s7 + $0x18] sm:$0xff] }
  0x17   : > { %311 = vmatprep.mubr.f32.mxu0 %v201_v25  ;;  %v205_v26 = vld [vmem:[%s1004_s7 + $0x28] sm:$0xff]  ;;  %678 = vmatprep.subr.bf16.mxu0 %v677_v20  ;;  %v204_v51 = vld [vmem:[%s1004_s7 + $0x20] sm:$0xff]  ;;  %v207_v53 = vld [vmem:[%s1004_s7 + $0x38] sm:$0xff] }
  0x18   : > { %700 = vmatprep.subr.bf16.mxu1 %v677_v20  ;;  %321 = vmatprep.mubr.f32.mxu1 %v205_v26  ;;  %v202_v54 = vld [vmem:[%s1004_s7 + $0x10] sm:$0xff] }
  0x19   : > { %v206_v55 = vld [vmem:[%s1004_s7 + $0x30] sm:$0xff]  ;;  %s175_s7 = sand.u32 1, %s863_s12   ;;  %s368_s12 = ssub.s32 (%p950_p4), 7, %s964_s27 }
  0x1a   : > { %680 = vmatpush3.bf16.msra.mxu0 %v679_v27  ;;  %708 = vmatpush3.bf16.msra.mxu1 %v679_v27  ;;  %s591_s8 = sshll.u32 %s175_s7, 5  ;;  %p369_p8 = scmp.lt.s32.totalorder (%p950_p4), %s368_s12, 4 }
  0x1b   : > { %682 = vmatprep.subr.bf16.mxu0 %v681_v28  ;;  %701 = vmatprep.subr.bf16.mxu1 %v681_v28  ;;  %s1072_s9 = scalar_lea.vmem [#allocation2], %s591_s8  }
  0x1e   : > { %684 = vmatpush3.bf16.msra.mxu0 %v683_v33  ;;  %709 = vmatpush3.bf16.msra.mxu1 %v683_v33 }
  0x1f   : > { %686 = vmatprep.subr.bf16.mxu0 %v685_v34  ;;  %702 = vmatprep.subr.bf16.mxu1 %v685_v34 }
  0x22   : > { %688 = vmatpush3.bf16.msra.mxu0 %v687_v39  ;;  %710 = vmatpush3.bf16.msra.mxu1 %v687_v39 }
  0x23   : > { %690 = vmatprep.subr.bf16.mxu0 %v689_v40  ;;  %703 = vmatprep.subr.bf16.mxu1 %v689_v40 }
  0x26   : > { %692 = vmatpush3.bf16.msra.mxu0 %v691_v45  ;;  %711 = vmatpush3.bf16.msra.mxu1 %v691_v45 }
  0x27   : > { %694 = vmatprep.subr.bf16.mxu0 %v693_v46  ;;  %704 = vmatprep.subr.bf16.mxu1 %v693_v46 }
  0x2a   : > { %696 = vmatpush3.bf16.msra.mxu0 %v695_v49  ;;  %712 = vmatpush3.bf16.msra.mxu1 %v695_v49 }
  0x2d   : > { %312 = vmatmul.mubr.f32.vlgmr.msra.gmra.mrb[0].mxu0 %v200_v50  ;;  %322 = vmatmul.mubr.f32.vlgmr.msra.gmra.mrb[0].mxu1 %v204_v51 }
  0x2e   : > { %316 = vmatprep.mubr.f32.mxu0 %v203_v52  ;;  %326 = vmatprep.mubr.f32.mxu1 %v207_v53 }
  0x31   : > { %317 = vmatmul.mubr.f32.gmra.mrb[2].mxu0 %v202_v54  ;;  %327 = vmatmul.mubr.f32.gmra.mrb[2].mxu1 %v206_v55 }
 0x100   : > { %v653_v56 = vpop.f32.mrb[0].mxu0  ;;  %v659_v57 = vpop.f32.mrb[0].mxu1 }
 0x101   : > { %v654_v59 = vpop.f32.mrb[1].mxu0  ;;  %v660_v60 = vpop.f32.mrb[1].mxu1 }
 0x102   : > { %v655_v61 = vadd.f32 %v654_v59, %v653_v56  ;;  %v661_v62 = vadd.f32 %v660_v60, %v659_v57 }
 0x104   : > { %v314_v63 = vadd.f32 %v655_v61, %v595_v58  ;;  %v324_v0 = vadd.f32 %v661_v62, %v595_v58  ;;  %v656_v1 = vpop.f32.mrb[2].mxu0  ;;  %v662_v2 = vpop.f32.mrb[2].mxu1 }
 0x105   : > { %v657_v3 = vpop.f32.mrb[3].mxu0  ;;  %v663_v4 = vpop.f32.mrb[3].mxu1 }
 0x106   : > { %v596_v5 = vmul.f32 -1.442695, %v314_v63  ;;  %v598_v6 = vmul.f32 -1.442695, %v324_v0  ;;  %v658_v7 = vadd.f32 %v657_v3, %v656_v1  ;;  %v664_v8 = vadd.f32 %v663_v4, %v662_v2 }
 0x108   : > { %801 = vpow2.f32 %v596_v5  ;;  %v319_v9 = vadd.f32 %v658_v7, %v595_v58  ;;  %v329_v10 = vadd.f32 %v664_v8, %v595_v58 }
 0x109   : > { %803 = vpow2.f32 %v598_v6 }
 0x10a   : > { %v597_v11 = vmul.f32 -1.442695, %v319_v9  ;;  %v599_v12 = vmul.f32 -1.442695, %v329_v10 }
 0x10c   : > { %805 = vpow2.f32 %v597_v11 }
 0x10d   : > { %807 = vpow2.f32 %v599_v12 }
 0x112   : > { %v802_v13 = vpop.eup %801 }
 0x113   : > { %v804_v14 = vpop.eup %803  ;;  %v344_v15 = vadd.f32 1.0, %v802_v13 }
 0x114   : > { %v346_v16 = vadd.f32 1.0, %v804_v14 }
 0x115   : > { %809 = vrcp.f32 %v344_v15 }
 0x116   : > { %v806_v17 = vpop.eup %805  ;;  %811 = vrcp.f32 %v346_v16 }
 0x117   : > { %v808_v18 = vpop.eup %807  ;;  %v345_v19 = vadd.f32 1.0, %v806_v17 }
 0x118   : > { %v347_v20 = vadd.f32 1.0, %v808_v18 }
 0x119   : > { %813 = vrcp.f32 %v345_v19 }
 0x11a   : > { %815 = vrcp.f32 %v347_v20 }
 0x11f   : > { %v810_v21 = vpop.eup %809  ;;  %366 = sbr.rel (!%p950_p4) target bundleno = 343 (0x157), region = 36 }
 0x120   : > { %v812_v22 = vpop.eup %811  ;;  %356 = vst [vmem:[%s1072_s9] sm:$0xff] %v810_v21 }
 0x121   : > { %358 = vst [vmem:[%s1072_s9 + $0x10] sm:$0xff] %v812_v22 }
 0x123   : > { %v814_v23 = vpop.eup %813 }
 0x124   : > { %v816_v24 = vpop.eup %815  ;;  %357 = vst [vmem:[%s1072_s9 + $0x8] sm:$0xff] %v814_v23 }
 0x125   : > { %359 = vst [vmem:[%s1072_s9 + $0x18] sm:$0xff] %v816_v24 }
 0x126   : > { %s1146_s12 = smov (!%p369_p8, %s368_s12), 4 }
 0x127   : > { %s602_s18 = sshll.u32 %s1146_s12, 7 }
 0x128   : > { %p605_p9 = scmp.eq.s32.totalorder %s602_s18, 0 }
 0x129   : > { %s1091_s21 = sshrl.u32 (!%p605_p9), %s1146_s12, 2 }
 0x12a   : > { %377 = sbr.rel (%p605_p9) target bundleno = 343 (0x157), region = 40  ;;  %p606_p10 = scmp.le.s32.totalorder (!%p605_p9), %s1091_s21, 0 }
 0x131   : > { %543 = sbr.rel (%p606_p10) target bundleno = 322 (0x142), region = 116  ;;  %s1139_s15 = smov (!%p606_p10), %s1085_s17 }
 0x132   : > { %s1140_s20 = smov (!%p606_p10), %s1072_s9  ;;  %s1100_s27 = smov (!%p606_p10), 0  }
 0x133   : > { %s885_s22 = smov (!%p606_p10), 0  }
 0x138 LB: >> { %v445_v25 = vld [vmem:[%s879_s20] sm:$0xff]  ;;  %v447_v26 = vld [vmem:[%s879_s20 + $0x8] sm:$0xff]  ;;  %v449_v27 = vld [vmem:[%s879_s20 + $0x10] sm:$0xff]  ;;  %s453_s23 = sadd.s32 1, %s883_s27  ;;  %s439_s22 = sadd.s32 1, %s887_s22   ;;  %s887_s22 = sphi %s885_s22, %s439_s22   ;;  %s883_s27 = sphi %s1100_s27, %s1141_s27   ;;  %s879_s20 = sphi %s1140_s20, %s458_s20   ;;  %s875_s15 = sphi %s1139_s15, %s459_s15  }
 0x139   : >> { %446 = vst [vmem:[%s875_s15] sm:$0xff] %v445_v25  ;;  %448 = vst [vmem:[%s875_s15 + $0x8] sm:$0xff] %v447_v26  ;;  %v451_v28 = vld [vmem:[%s879_s20 + $0x18] sm:$0xff]  ;;  %p454_p11 = scmp.ge.s32.totalorder %s453_s23, %s1091_s21  ;;  %p438_p12 = scmp.ge.s32.totalorder %s439_s22, %s1091_s21 }
 0x13a   : >> { %450 = vst [vmem:[%s875_s15 + $0x10] sm:$0xff] %v449_v27  ;;  %452 = vst [vmem:[%s875_s15 + $0x18] sm:$0xff] %v451_v28 }
 0x13b   : >> { %s1148_s23 = smov (%p454_p11, %s453_s23), 0  ;;  %441 = sbr.rel (!%p438_p12) target bundleno = 312 (0x138), region = 122 }
 0x13c   : >> { %s607_s24 = sshll.u32 %s1148_s23, 5  ;;  %s1141_s27 = smov %s1148_s23 }
 0x13d   : >> { %s458_s20 = scalar_lea.vmem %s1072_s9, %s607_s24 [#allocation2]   ;;  %s459_s15 = scalar_lea.vmem %s1085_s17, %s607_s24  }
 0x142 PF: > { %s1116_s25 = sand.u32 3, %s1146_s12   ;;  %s619_s26 = sshll.u32 %s1091_s21, 5 }
 0x143   : > { %s464_s28 = scalar_lea.vmem %s1072_s9, %s619_s26 [#allocation2]   ;;  %s466_s29 = scalar_lea.vmem %s1085_s17, %s619_s26  }
 0x144   : > { %p612_p13 = scmp.le.s32.totalorder %s1116_s25, 0 }
 0x145   : > { %s889_s30 = smov (!%p612_p13), %s466_s29   ;;  %s893_s4 = smov (!%p612_p13), %s464_s28  }
 0x146   : > { %557 = sbr.rel (%p612_p13) target bundleno = 343 (0x157), region = 127  ;;  %s897_s5 = smov (!%p612_p13), 0  }
 0x147   : > { %s901_s6 = smov (!%p612_p13), 0  }
 0x14d LB: >> { %v476_v29 = vld [vmem:[%s895_s4] sm:$0xff]  ;;  %s478_s7 = sadd.s32 1, %s899_s5  ;;  %s470_s6 = sadd.s32 1, %s903_s6   ;;  %s903_s6 = sphi %s901_s6, %s470_s6   ;;  %s899_s5 = sphi %s897_s5, %s898_s5   ;;  %s895_s4 = sphi %s893_s4, %s483_s4   ;;  %s891_s30 = sphi %s889_s30, %s484_s30  }
 0x14e   : >> { %477 = vst [vmem:[%s891_s30] sm:$0xff] %v476_v29  ;;  %p479_p0 = scmp.ge.s32.totalorder %s478_s7, %s1116_s25  ;;  %p469_p1 = scmp.ge.s32.totalorder %s470_s6, %s1116_s25 }
 0x150   : >> { %s1150_s7 = smov (%p479_p0, %s478_s7), 0  ;;  %472 = sbr.rel (!%p469_p1) target bundleno = 333 (0x14d), region = 133 }
 0x151   : >> { %s613_s8 = sshll.u32 %s1150_s7, 3  ;;  %s898_s5 = smov %s1150_s7  }
 0x152   : >> { %s483_s4 = scalar_lea.vmem %s464_s28, %s613_s8 [#allocation2]   ;;  %s484_s30 = scalar_lea.vmem %s466_s29, %s613_s8  }
 0x157 PF: > { %p10_p2 = scmp.ge.s32.totalorder %s940_s16, 4   ;;  %s1142_s12 = smov %s867_s13 }
 0x158   : > { %s1143_s13 = smov %s948_s19  ;;  %s1144_s14 = smov %s940_s16 }
 0x159   :  { %12 = sbr.rel (!%p10_p2) target bundleno = 2 (0x2), region = 144 }

</bundles_post_ra>
